<compile_context>
chip_gen: v5e
topology: v5e:2x2
jax: 0.10.0
libtpu: 0.0.40
codegen_flags: <defaults>
</compile_context>

<pallas_src>
import jax
import jax.numpy as jnp
from jax.experimental import pallas as pl
from jax.experimental.pallas import tpu as pltpu

KERNEL_SIZE = 5                     # moving-average window; odd
_PAD = (KERNEL_SIZE - 1) // 2
_LANE = 128


def _round_up(x, m):
    return -(-x // m) * m


def _sublane(dtype):
    # native packed tile rows: f32 -> 8, bf16 -> 16, int8/fp8 -> 32
    return max(8, 32 // jnp.dtype(dtype).itemsize)


def _vmem_capacity_bytes():
    try:
        return int(pltpu.get_tpu_info().vmem_capacity_bytes)
    except Exception:
        return 64 * 1024 * 1024      # conservative default (v7x per-TC)


def _block_target_bytes(cap):
    # ~cap/20 leaves room for 6 pipelined I/O buffers + f32 temps.
    return max(1 << 20, min(8 << 20, cap // 20))


def _vmem_limit(block_io_bytes, block_f32_bytes, cap):
    need = 6 * block_io_bytes + 6 * block_f32_bytes + (1 << 20)
    return int(min(max(need, 16 << 20), int(0.85 * cap)))


# ---------------------------------------------------------------------------
# Kernels
# ---------------------------------------------------------------------------

def _decomp_prepadded_kernel(x_ref, res_ref, mean_ref):
    """Block (Lp, tc); time axis already edge-padded by _PAD rows on both
    ends, so roll wrap-around only lands in rows the wrapper slices off.
    No masks, no iota -> minimal temporaries."""
    xf = x_ref[...].astype(jnp.float32)
    Lp = xf.shape[0]
    acc = xf                                              # center tap
    for i in range(1, _PAD + 1):
        acc = acc + pltpu.roll(xf, shift=Lp - i, axis=0)  # x[t + i]
        acc = acc + pltpu.roll(xf, shift=i, axis=0)       # x[t - i]
    mean = acc * (1.0 / KERNEL_SIZE)
    mean_ref[...] = mean.astype(mean_ref.dtype)
    res_ref[...] = (xf - mean).astype(res_ref.dtype)


def _decomp_masked_kernel(x_ref, res_ref, mean_ref):
    """Block (L, tc) holding the full time axis; replicate padding is done
    in-kernel with lane-broadcast edge rows and an (L, 1) iota mask (lean
    temps: no full-size broadcasts)."""
    xf = x_ref[...].astype(jnp.float32)
    L = xf.shape[0]
    first = xf[0:1, :]                 # (1, tc) — implicit broadcast in where
    last = xf[L - 1:L, :]
    t = jax.lax.broadcasted_iota(jnp.int32, (L, 1), 0)
    acc = xf
    for i in range(1, _PAD + 1):
        fwd = pltpu.roll(xf, shift=L - i, axis=0)         # x[(t + i) % L]
        acc = acc + jnp.where(t + i >= L, last, fwd)
        bwd = pltpu.roll(xf, shift=i, axis=0)             # x[(t - i) % L]
        acc = acc + jnp.where(t - i < 0, first, bwd)
    mean = acc * (1.0 / KERNEL_SIZE)
    mean_ref[...] = mean.astype(mean_ref.dtype)
    res_ref[...] = (xf - mean).astype(res_ref.dtype)


# ---------------------------------------------------------------------------
# Wrappers
# ---------------------------------------------------------------------------

def _decomp_lane_dense(x):
    """C % 128 == 0: no fold/transpose; run directly on (B, L, C)."""
    B, L, C = x.shape
    itemsize = jnp.dtype(x.dtype).itemsize
    cap = _vmem_capacity_bytes()
    max_block = _block_target_bytes(cap)

    tc = max(_LANE, (max_block // max(1, L * itemsize)) // _LANE * _LANE)
    tc = min(tc, C)
    while C % tc:
        tc -= _LANE
    # keep both v7x TensorCores busy when B == 1 would give a single tile
    if B * (C // tc) < 2 and tc > _LANE:
        tc = max(_LANE, (tc // 2) // _LANE * _LANE)
        while C % tc:
            tc -= _LANE

    vmem_limit = _vmem_limit(L * tc * itemsize, L * tc * 4, cap)
    spec = pl.BlockSpec((None, L, tc), lambda b, j: (b, 0, j))

    res, mean = pl.pallas_call(
        _decomp_masked_kernel,
        out_shape=(jax.ShapeDtypeStruct((B, L, C), x.dtype),
                   jax.ShapeDtypeStruct((B, L, C), x.dtype)),
        grid=(B, C // tc),
        in_specs=[spec],
        out_specs=(spec, spec),
        compiler_params=pltpu.CompilerParams(
            dimension_semantics=("parallel", "parallel"),
            vmem_limit_bytes=vmem_limit),
    )(x)
    return res, mean


def _decomp_folded(x):
    """Small / non-128-multiple C: fold to a lane-dense (L, B*C) slab."""
    B, L, C = x.shape
    W = B * C
    itemsize = jnp.dtype(x.dtype).itemsize
    sub = _sublane(x.dtype)
    Lp = _round_up(L + 2 * _PAD, sub)          # edge pads + sublane rounding

    cap = _vmem_capacity_bytes()
    max_block = _block_target_bytes(cap)

    W128 = _round_up(W, _LANE)
    tc = max(_LANE, (max_block // max(1, Lp * itemsize)) // _LANE * _LANE)
    tc = min(tc, W128)
    if W128 // tc < 2 and tc > _LANE:          # >= 2 lane tiles (v7x megacore)
        tc = max(_LANE, _round_up(W128 // 2, _LANE))
    Wp = _round_up(W128, tc)                   # pad W up instead of shrinking tc

    # Single fused copy: fold + edge-replicate time pad (both ends) + lane pad.
    # Padded lanes carry edge-replicated values; they are sliced off below, so
    # their contents are irrelevant (and finite, so the arithmetic is safe).
    x2 = jnp.transpose(x, (1, 0, 2)).reshape(L, W)
    x2 = jnp.pad(x2, ((_PAD, Lp - L - _PAD), (0, Wp - W)), mode="edge")

    vmem_limit = _vmem_limit(Lp * tc * itemsize, Lp * tc * 4, cap)
    spec = pl.BlockSpec((Lp, tc), lambda j: (0, j))

    # TODO(synk): add a time-axis grid dimension with a _PAD-row halo for very
    # long sequences (L >> 8192); typical SCINet lengths fit in one block.
    res2, mean2 = pl.pallas_call(
        _decomp_prepadded_kernel,
        out_shape=(jax.ShapeDtypeStruct((Lp, Wp), x.dtype),
                   jax.ShapeDtypeStruct((Lp, Wp), x.dtype)),
        grid=(Wp // tc,),
        in_specs=[spec],
        out_specs=(spec, spec),
        input_output_aliases={0: 0},           # res reuses the padded slab
        compiler_params=pltpu.CompilerParams(
            dimension_semantics=("parallel",),
            vmem_limit_bytes=vmem_limit),
    )(x2)

    def unfold(y2):
        return jnp.transpose(y2[_PAD:_PAD + L, :W].reshape(L, B, C), (1, 0, 2))

    return unfold(res2), unfold(mean2)


def series_decomp(x):
    """Returns (res, moving_mean), both shaped like x = (B, L, C)."""
    _, _, C = x.shape
    if C % _LANE == 0:
        return _decomp_lane_dense(x)
    return _decomp_folded(x)


# ---------------------------------------------------------------------------
# Self-test
# ---------------------------------------------------------------------------

if __name__ == "__main__":
    def reference(x):
        pad = _PAD
        L = x.shape[1]
        xp = jnp.concatenate(
            [jnp.repeat(x[:, 0:1, :], pad, axis=1),
             x,
             jnp.repeat(x[:, -1:, :], pad, axis=1)], axis=1)
        windows = jnp.stack([xp[:, i:i + L, :] for i in range(KERNEL_SIZE)],
                            axis=0)
        mean = windows.mean(axis=0)
        return x - mean, mean

    key = jax.random.PRNGKey(0)
    keys = jax.random.split(key, 2)
    # (2,16,8)  exercises the folded path (C not a multiple of 128)
    # (2,16,128) exercises the direct lane-dense path (no fold)
    for k, (B, L, C) in zip(keys, [(2, 16, 8), (2, 16, 128)]):
        x = jax.random.normal(k, (B, L, C), dtype=jnp.float32)
        res, mean = series_decomp(x)
        jax.block_until_ready((res, mean))

        res_ref, mean_ref = reference(x)
        assert res.shape == (B, L, C) and mean.shape == (B, L, C)
        assert jnp.allclose(mean, mean_ref, atol=1e-5, rtol=1e-5)
        assert jnp.allclose(res, res_ref, atol=1e-5, rtol=1e-5)

    print("KERNEL_OK")
</pallas_src>

<mosaic_0001>
module attributes {stable_mosaic.version = 11 : i64} {
  func.func @_decomp_prepadded_kernel(%arg0: i32, %arg1: memref<24x128xf32, #tpu.memory_space<vmem>>, %arg2: memref<24x128xf32, #tpu.memory_space<vmem>>, %arg3: memref<24x128xf32, #tpu.memory_space<vmem>>) attributes {dimension_semantics = [#tpu.dimension_semantics<parallel>], iteration_bounds = array<i64: 1>, scalar_prefetch = 0 : i64, scratch_operands = 0 : i64, tpu.core_type = #tpu.core_type<tc>, window_params = [{transform_indices = @transform_0, window_bounds = array<i64: 24, 128>}, {transform_indices = @transform_1, window_bounds = array<i64: 24, 128>}, {transform_indices = @transform_2, window_bounds = array<i64: 24, 128>}]} {
    %c0 = arith.constant 0 : index
    %c0_0 = arith.constant 0 : index
    %0 = vector.load %arg1[%c0, %c0_0] : memref<24x128xf32, #tpu.memory_space<vmem>>, vector<24x128xf32>
    %c23_i32 = arith.constant 23 : i32
    %1 = tpu.dynamic_rotate %0 by %c23_i32 dim 0 : vector<24x128xf32>, i32 -> vector<24x128xf32>
    %2 = arith.addf %0, %1 : vector<24x128xf32>
    %c1_i32 = arith.constant 1 : i32
    %3 = tpu.dynamic_rotate %0 by %c1_i32 dim 0 : vector<24x128xf32>, i32 -> vector<24x128xf32>
    %4 = arith.addf %2, %3 : vector<24x128xf32>
    %c22_i32 = arith.constant 22 : i32
    %5 = tpu.dynamic_rotate %0 by %c22_i32 dim 0 : vector<24x128xf32>, i32 -> vector<24x128xf32>
    %6 = arith.addf %4, %5 : vector<24x128xf32>
    %c2_i32 = arith.constant 2 : i32
    %7 = tpu.dynamic_rotate %0 by %c2_i32 dim 0 : vector<24x128xf32>, i32 -> vector<24x128xf32>
    %8 = arith.addf %6, %7 : vector<24x128xf32>
    %cst = arith.constant 2.000000e-01 : f32
    %9 = vector.broadcast %cst : f32 to vector<24x128xf32>
    %10 = arith.mulf %8, %9 : vector<24x128xf32>
    %c0_1 = arith.constant 0 : index
    %c0_2 = arith.constant 0 : index
    %11 = vector.load %arg3[%c0_1, %c0_2] : memref<24x128xf32, #tpu.memory_space<vmem>>, vector<24x128xf32>
    tpu.vector_store %arg3[%c0_1, %c0_2], %10 {strides = array<i32>} : memref<24x128xf32, #tpu.memory_space<vmem>>, vector<24x128xf32>,
    %12 = arith.subf %0, %10 : vector<24x128xf32>
    %c0_3 = arith.constant 0 : index
    %c0_4 = arith.constant 0 : index
    %13 = vector.load %arg2[%c0_3, %c0_4] : memref<24x128xf32, #tpu.memory_space<vmem>>, vector<24x128xf32>
    tpu.vector_store %arg2[%c0_3, %c0_4], %12 {strides = array<i32>} : memref<24x128xf32, #tpu.memory_space<vmem>>, vector<24x128xf32>,
    return
  }
  func.func @transform_0(%arg0: i32) -> (i32, i32) {
    %c0_i32 = arith.constant 0 : i32
    %c0_i32_0 = arith.constant 0 : i32
    return %c0_i32, %arg0 : i32, i32
  }
  func.func @transform_1(%arg0: i32) -> (i32, i32) {
    %c0_i32 = arith.constant 0 : i32
    %c0_i32_0 = arith.constant 0 : i32
    return %c0_i32, %arg0 : i32, i32
  }
  func.func @transform_2(%arg0: i32) -> (i32, i32) {
    %c0_i32 = arith.constant 0 : i32
    %c0_i32_0 = arith.constant 0 : i32
    return %c0_i32, %arg0 : i32, i32
  }
}

</mosaic_0001>

<bundles_post_ra>
// kernel: tpu_custom_call.1
= control target key start
LH: loop header
LB: loop body
LE: loop exit
PB: predicated region body
PF: predicated region fallthrough
CT: control target
= control target key end

     0   :  { %8 = vsyncpa [#allocation3], 0  ;;  %s271_s0 = inlined_call_operand.hbm [shape: f32[24,128], index: 0, kind: input, shape index: {}, may-alias: {0,1}]   ;;  %s272_s1 = inlined_call_operand.hbm [shape: f32[24,128], index: 1, kind: output, shape index: {0}, may-alias: {0,1}]   ;;  %s273_s2 = inlined_call_operand.hbm [shape: f32[24,128], index: 2, kind: output, shape index: {1}]  }
   0x1   :  { %9 = vsyncpa [#allocation4], 0 }
   0x2   :  { %10 = vsyncpa [#allocation7], 0  ;;  %s15_s11 = sshll.u32 %s271_s0, 4  ;;  %s205_s12 = smov [#allocation2]   ;;  %s16_s11 = int_to_ptr.hbm [resolvable:$true] %s15_s11 }
   0x3   :  { %s17_s13 = sshll.u32 %s205_s12, 4  ;;  %s206_s14 = smov 128   ;;  %s18_s13 = int_to_ptr.vmem [resolvable:$true] %s17_s13 }
   0x4   :  { %s207_s15 = smov 8  }
   0x5   :  { %23 = dma.hbm_to_vmem [thread:$0]  %s16_s11, 384, %s18_s13, [#allocation3], %s206_s14, %s206_s14, %s207_s15  }
   0x6   :  { %199 = dma.done.wait [#allocation3], 384  }
   0x7   :  { %200 = vsyncadd [#allocation3], 4294966912  ;;  %v34_v0 = vlaneseq  ;;  %v28_v2 = vld [vmem:[#allocation2] sm:$0xff]  ;;  %v231_v3 = vld [vmem:[#allocation2 + $0x8] sm:$0xff]  ;;  %s208_s0 = smov [#allocation6]   ;;  %s104_s19 = sshll.u32 %s273_s2, 4  ;;  %s105_s19 = int_to_ptr.hbm [resolvable:$true] %s104_s19 }
   0x8   :  { %v233_v4 = vld [vmem:[#allocation2 + $0x10] sm:$0xff]  ;;  %v31_v5 = vrot.slane %v28_v2, 1  ;;  %v32_v6 = vrot.slane %v231_v3, 1  ;;  %v43_v7 = vrot.slane %v28_v2, 7  ;;  %v53_v9 = vrot.slane %v28_v2, 2  ;;  %s102_s16 = sshll.u32 %s208_s0, 4  ;;  %s103_s16 = int_to_ptr.vmem [resolvable:$true] %s102_s16 }
   0x9   :  { %v35_v1 = vshrl.u32 %v34_v0, 7  ;;  %v45_v8 = vrot.slane %v233_v4, 7  ;;  %v54_v10 = vrot.slane %v231_v3, 2  ;;  %v63_v11 = vrot.slane %v28_v2, 6  ;;  %s91_s22 = sshll.u32 %s272_s1, 4  ;;  %s209_s23 = smov [#allocation5]   ;;  %s92_s22 = int_to_ptr.hbm [resolvable:$true] %s91_s22 }
   0xa   :  { %v65_v12 = vrot.slane %v233_v4, 6  ;;  %v33_v15 = vrot.slane %v233_v4, 1  ;;  %v44_v16 = vrot.slane %v231_v3, 7  ;;  %v55_v19 = vrot.slane %v233_v4, 2  ;;  %s89_s24 = sshll.u32 %s209_s23, 4  ;;  %s90_s24 = int_to_ptr.vmem [resolvable:$true] %s89_s24 }
   0xb   :  { %vm36_vm0 = vcmp.lt.s32.totalorder %v35_v1, 7  ;;  %vm46_vm1 = vcmp.lt.s32.totalorder %v35_v1, 1  ;;  %vm56_vm2 = vcmp.lt.s32.totalorder %v35_v1, 6  ;;  %vm66_vm3 = vcmp.lt.s32.totalorder %v35_v1, 2 }
   0xc   :  { %v38_v13 = vsel %vm36_vm0, %v31_v5, %v32_v6  ;;  %v49_v14 = vsel %vm46_vm1, %v45_v8, %v43_v7  ;;  %v58_v18 = vsel %vm56_vm2, %v53_v9, %v54_v10  ;;  %v37_v20 = vsel %vm36_vm0, %v32_v6, %v33_v15 }
   0xd   :  { %v40_v17 = vadd.f32 %v38_v13, %v28_v2  ;;  %v48_v21 = vsel %vm46_vm1, %v43_v7, %v44_v16  ;;  %v64_v22 = vrot.slane %v231_v3, 6  ;;  %v39_v23 = vsel %vm36_vm0, %v33_v15, %v31_v5 }
   0xe   :  { %v41_v25 = vadd.f32 %v37_v20, %v231_v3  ;;  %v42_v26 = vadd.f32 %v39_v23, %v233_v4  ;;  %v69_v27 = vsel %vm66_vm3, %v65_v12, %v63_v11  ;;  %v57_v28 = vsel %vm56_vm2, %v54_v10, %v55_v19 }
   0xf   :  { %v50_v24 = vadd.f32 %v49_v14, %v40_v17  ;;  %v47_v29 = vsel %vm46_vm1, %v44_v16, %v45_v8  ;;  %v59_v30 = vsel %vm56_vm2, %v55_v19, %v53_v9  ;;  %v68_v34 = vsel %vm66_vm3, %v63_v11, %v64_v22 }
  0x10   :  { %v51_v32 = vadd.f32 %v48_v21, %v41_v25  ;;  %v52_v33 = vadd.f32 %v47_v29, %v42_v26  ;;  %v67_v35 = vsel %vm66_vm3, %v64_v22, %v65_v12 }
  0x11   :  { %v60_v31 = vadd.f32 %v58_v18, %v50_v24 }
  0x12   :  { %v61_v37 = vadd.f32 %v57_v28, %v51_v32  ;;  %v62_v38 = vadd.f32 %v59_v30, %v52_v33 }
  0x13   :  { %v70_v36 = vadd.f32 %v69_v27, %v60_v31 }
  0x14   :  { %v71_v40 = vadd.f32 %v68_v34, %v61_v37  ;;  %v72_v41 = vadd.f32 %v67_v35, %v62_v38 }
  0x15   :  { %v73_v39 = vmul.f32 0.2, %v70_v36 }
  0x16   :  { %v74_v42 = vmul.f32 0.2, %v71_v40  ;;  %v75_v43 = vmul.f32 0.2, %v72_v41 }
  0x17   :  { %76 = vst [vmem:[#allocation6] sm:$0xff] %v73_v39  ;;  %v79_v44 = vsub.f32 %v28_v2, %v73_v39 }
  0x18   :  { %77 = vst [vmem:[#allocation6 + $0x8] sm:$0xff] %v74_v42  ;;  %v80_v45 = vsub.f32 %v231_v3, %v74_v42  ;;  %v81_v46 = vsub.f32 %v233_v4, %v75_v43 }
  0x19   :  { %78 = vst [vmem:[#allocation6 + $0x10] sm:$0xff] %v75_v43 }
  0x1a   :  { %82 = vst [vmem:[#allocation5] sm:$0xff] %v79_v44  ;;  %110 = dma.vmem_to_hbm [thread:$0]  %s103_s16, 384, %s105_s19, [#allocation7], %s206_s14, %s206_s14, %s207_s15  }
  0x1b   :  { %83 = vst [vmem:[#allocation5 + $0x8] sm:$0xff] %v80_v45 }
  0x1c   :  { %84 = vst [vmem:[#allocation5 + $0x10] sm:$0xff] %v81_v46 }
  0x1d   :  { %97 = dma.vmem_to_hbm [thread:$0]  %s90_s24, 384, %s92_s22, [#allocation4], %s206_s14, %s206_s14, %s207_s15  }
  0x1e   :  { %201 = dma.done.wait [#allocation4], 384  }
  0x1f   :  { %202 = vsyncadd [#allocation4], 4294966912 }
  0x20   :  { %203 = dma.done.wait [#allocation7], 384  }
  0x21   :  { %204 = vsyncadd [#allocation7], 4294966912 }
  0x22   :  { %119 = vsyncpa [#allocation3], 1 }
  0x23   :  { %120 = vsyncpa [#allocation4], 1 }
  0x24   :  { %121 = vsyncpa [#allocation7], 1 }

</bundles_post_ra>
